<compile_context>
chip_gen: v7x
topology: tpu7x:2x2x1
jax: 0.10.0
libtpu: 0.0.40
codegen_flags: <defaults>
</compile_context>

<pallas_src>
import functools

import jax
import jax.numpy as jnp
from jax.experimental import pallas as pl
from jax.experimental.pallas import tpu as pltpu


# ----------------------------------------------------------------------------
# Kernel
# ----------------------------------------------------------------------------
def _causal_conv_relu(x_f32, w_ref, b_ref, *, ksize, dilation):
    """Dilated causal conv (stride 1) + bias + ReLU on one (C_in, L) slab.

    x_f32 : (C_in, L) float32 value
    w_ref : (K, C_out, C_in) bfloat16 ref  (tap index on the leading axis)
    b_ref : (C_out, 1) float32 ref
    returns (C_out, L) float32
    """
    c_in, l = x_f32.shape
    c_out = w_ref.shape[1]
    pad = dilation * (ksize - 1)

    xp = x_f32
    if pad > 0:
        # Causal left zero-padding, done in VMEM (no HBM pad pass in wrapper).
        xp = jnp.concatenate([jnp.zeros((c_in, pad), jnp.float32), xp], axis=1)

    acc = jnp.zeros((c_out, l), jnp.float32)
    for j in range(ksize):  # static unroll over K taps
        tap = xp[:, j * dilation: j * dilation + l].astype(jnp.bfloat16)
        acc = acc + jnp.dot(w_ref[j], tap, preferred_element_type=jnp.float32)
    return jnp.maximum(acc + b_ref[...], 0.0)


def _temporal_block_kernel(xc_ref, xr_ref, w1_ref, b1_ref, w2_ref, b2_ref,
                           o_ref, *, ksize, dilation):
    """One grid step = one conv batch element b.

    xc_ref : (1, C, L)    f32  -- x[b]         (conv input)
    xr_ref : (1, N, L)    f32  -- x[:, b, :]   (residual rows, from x^T)
    w*_ref : (K, C, C)    bf16
    b*_ref : (C, 1)       f32
    o_ref  : (N, 1, C, L) f32  -- y[:, b, :, :]
    """
    h1 = _causal_conv_relu(xc_ref[0], w1_ref, b1_ref, ksize=ksize, dilation=dilation)
    h2 = _causal_conv_relu(h1, w2_ref, b2_ref, ksize=ksize, dilation=dilation)
    res = xr_ref[0]                                        # (N, L)
    # y[a, b, c, l] = relu(conv_out[b, c, l] + x[a, b, l])
    o_ref[...] = jnp.maximum(h2[None, None, :, :] + res[:, None, None, :], 0.0)


# ----------------------------------------------------------------------------
# Wrapper
# ----------------------------------------------------------------------------
def temporal_block_forward(x, params, *, kernel_size, stride, dilation, padding):
    """Forward pass of TemporalBlock.  x: (N, C, L) float32 -> (N, N, C, L)."""
    assert stride == 1, "TCN TemporalBlock is used with stride=1"
    w1, b1, w2, b2 = params
    n, c_in, l = x.shape
    c_out = w1.shape[0]
    assert c_in == c_out, (
        "downsample (Conv1d applied to a 4-D tensor) raises in PyTorch; "
        "only n_inputs == n_outputs is runnable")
    assert padding == dilation * (kernel_size - 1), (
        "causal padding must preserve sequence length, otherwise the PyTorch "
        "residual add fails")
    assert n == c_in, (
        "the module's residual adds (N,C,L) to (N,C,1,L); that broadcast is "
        "only defined when N == C")
    # TODO(synk): nn.Dropout(p=0.2) implemented as identity (eval mode).

    # Tap index leading; (C_out, C_in) tile (sublane, lane) aligned; bf16 MXU
    # operands with f32 accumulation.
    w1r = jnp.transpose(w1, (2, 0, 1)).astype(jnp.bfloat16)   # (K, C_out, C_in)
    w2r = jnp.transpose(w2, (2, 0, 1)).astype(jnp.bfloat16)   # (K, C_out, C_out)
    b1c = b1.reshape(c_out, 1).astype(jnp.float32)
    b2c = b2.reshape(c_out, 1).astype(jnp.float32)
    # Residual rows for output slab b are x[:, b, :]; present them as a
    # leading-axis block of a transposed copy instead of materializing the
    # (N, N, C, L) broadcast in HBM.
    x_t = jnp.transpose(x, (1, 0, 2))                         # (C, N, L)

    kernel = functools.partial(_temporal_block_kernel,
                               ksize=kernel_size, dilation=dilation)
    return pl.pallas_call(
        kernel,
        out_shape=jax.ShapeDtypeStruct((n, n, c_out, l), jnp.float32),
        grid=(n,),
        in_specs=[
            pl.BlockSpec((1, c_in, l), lambda b: (b, 0, 0)),               # x[b]
            pl.BlockSpec((1, n, l), lambda b: (b, 0, 0)),                  # x[:, b, :]
            pl.BlockSpec((kernel_size, c_out, c_in), lambda b: (0, 0, 0)),  # w1 (resident)
            pl.BlockSpec((c_out, 1), lambda b: (0, 0)),                     # b1
            pl.BlockSpec((kernel_size, c_out, c_out), lambda b: (0, 0, 0)), # w2
            pl.BlockSpec((c_out, 1), lambda b: (0, 0)),                     # b2
        ],
        out_specs=pl.BlockSpec((n, 1, c_out, l), lambda b: (0, b, 0, 0)),
        compiler_params=pltpu.CompilerParams(dimension_semantics=("parallel",)),
    )(x, x_t, w1r, b1c, w2r, b2c)


# ----------------------------------------------------------------------------
# Reference / init / demo
# ----------------------------------------------------------------------------
def init_params(key, n_inputs, n_outputs, kernel_size):
    """Deterministic synthetic weights: N(0, 0.01) like init_weights()."""
    k1, k2, k3, k4 = jax.random.split(key, 4)
    w1 = 0.01 * jax.random.normal(k1, (n_outputs, n_inputs, kernel_size), jnp.float32)
    b1 = 0.01 * jax.random.normal(k2, (n_outputs,), jnp.float32)
    w2 = 0.01 * jax.random.normal(k3, (n_outputs, n_outputs, kernel_size), jnp.float32)
    b2 = 0.01 * jax.random.normal(k4, (n_outputs,), jnp.float32)
    return (w1, b1, w2, b2)


def _reference_forward(x, params, *, kernel_size, dilation, padding):
    """Pure-JAX f32 reference reproducing the PyTorch forward (eval mode)."""
    w1, b1, w2, b2 = params
    l = x.shape[2]

    def conv_relu(inp, w, b):
        xp = jnp.pad(inp, ((0, 0), (0, 0), (padding, 0)))
        out = b[None, :, None]
        for j in range(kernel_size):
            out = out + jnp.einsum(
                "oc,ncl->nol", w[:, :, j], xp[:, :, j * dilation: j * dilation + l])
        return jnp.maximum(out, 0.0)

    out = conv_relu(conv_relu(x, w1, b1), w2, b2)     # (N, C, L)
    res4 = x[:, :, None, :]                           # (N, C, 1, L)
    return jnp.maximum(out + res4, 0.0)               # (N, N, C, L)


if __name__ == "__main__":
    key = jax.random.PRNGKey(0)
    kx, kp = jax.random.split(key)

    # Small shapes; N == C_in == C_out so the module's (quirky) residual
    # broadcast is well-defined.  L=128 keeps the output lane-dense.
    N, C, L = 4, 4, 128
    kernel_size, stride, dilation = 3, 1, 1
    padding = (kernel_size - 1) * dilation

    x = jax.random.normal(kx, (N, C, L), jnp.float32)
    params = init_params(kp, C, C, kernel_size)

    y = temporal_block_forward(
        x, params,
        kernel_size=kernel_size, stride=stride,
        dilation=dilation, padding=padding,
    )
    y = jax.block_until_ready(y)

    assert y.shape == (N, N, C, L), y.shape
    assert bool(jnp.all(jnp.isfinite(y)))
    assert bool(jnp.all(y >= 0.0))

    # Correctness vs. pure-JAX f32 reference (kernel matmuls run bf16 with f32
    # accumulation; bias / ReLU / residual are f32).
    ref = _reference_forward(x, params, kernel_size=kernel_size,
                             dilation=dilation, padding=padding)
    max_err = float(jnp.max(jnp.abs(y - ref)))
    assert max_err < 5e-3, f"max |kernel - reference| = {max_err}"

    print("KERNEL_OK")
</pallas_src>

<mosaic_0001>
module attributes {stable_mosaic.version = 11 : i64} {
  func.func @_temporal_block_kernel(%arg0: i32, %arg1: memref<1x4x128xf32, #tpu.memory_space<vmem>>, %arg2: memref<1x4x128xf32, #tpu.memory_space<vmem>>, %arg3: memref<3x4x4xbf16, #tpu.memory_space<vmem>>, %arg4: memref<4x1xf32, #tpu.memory_space<vmem>>, %arg5: memref<3x4x4xbf16, #tpu.memory_space<vmem>>, %arg6: memref<4x1xf32, #tpu.memory_space<vmem>>, %arg7: memref<4x1x4x128xf32, #tpu.memory_space<vmem>>) attributes {dimension_semantics = [#tpu.dimension_semantics<parallel>], iteration_bounds = array<i64: 4>, scalar_prefetch = 0 : i64, scratch_operands = 0 : i64, tpu.core_type = #tpu.core_type<tc>, window_params = [{transform_indices = @transform_0, window_bounds = array<i64: 1, 4, 128>}, {transform_indices = @transform_1, window_bounds = array<i64: 1, 4, 128>}, {pipeline_mode = #tpu.pipeline_mode<synchronous>, transform_indices = @transform_2, window_bounds = array<i64: 3, 4, 4>}, {pipeline_mode = #tpu.pipeline_mode<synchronous>, transform_indices = @transform_3, window_bounds = array<i64: 4, 1>}, {pipeline_mode = #tpu.pipeline_mode<synchronous>, transform_indices = @transform_4, window_bounds = array<i64: 3, 4, 4>}, {pipeline_mode = #tpu.pipeline_mode<synchronous>, transform_indices = @transform_5, window_bounds = array<i64: 4, 1>}, {transform_indices = @transform_6, window_bounds = array<i64: 4, 1, 4, 128>}]} {
    %c0 = arith.constant 0 : index
    %c0_0 = arith.constant 0 : index
    %c0_1 = arith.constant 0 : index
    %0 = vector.load %arg1[%c0, %c0_0, %c0_1] : memref<1x4x128xf32, #tpu.memory_space<vmem>>, vector<1x4x128xf32>
    %1 = vector.shape_cast %0 : vector<1x4x128xf32> to vector<4x128xf32>
    %cst = arith.constant 0.000000e+00 : f32
    %2 = vector.broadcast %cst : f32 to vector<4x2xf32>
    %3 = tpu.concatenate %2, %1 in 1 : vector<4x2xf32>, vector<4x128xf32> -> vector<4x130xf32>
    %cst_2 = arith.constant 0.000000e+00 : f32
    %4 = vector.broadcast %cst_2 : f32 to vector<4x128xf32>
    %5 = vector.extract_strided_slice %3 {offsets = [0, 0], sizes = [4, 128], strides = [1, 1]} : vector<4x130xf32> to vector<4x128xf32>
    %6 = arith.truncf %5 : vector<4x128xf32> to vector<4x128xbf16>
    %c0_3 = arith.constant 0 : index
    %c0_4 = arith.constant 0 : index
    %c0_5 = arith.constant 0 : index
    %7 = vector.load %arg3[%c0_3, %c0_4, %c0_5] : memref<3x4x4xbf16, #tpu.memory_space<vmem>>, vector<1x4x4xbf16>
    %8 = vector.shape_cast %7 : vector<1x4x4xbf16> to vector<4x4xbf16>
    %cst_6 = arith.constant dense<0.000000e+00> : vector<4x128xf32>
    %9 = tpu.matmul %8, %6, %cst_6 {dimension_numbers = #tpu.dot_dimension_numbers<[1], [0], [0], [1], [0, 0, 1, 1], [], []>} : vector<4x4xbf16>, vector<4x128xbf16>, vector<4x128xf32> -> vector<4x128xf32>
    %10 = arith.addf %4, %9 : vector<4x128xf32>
    %11 = vector.extract_strided_slice %3 {offsets = [0, 1], sizes = [4, 128], strides = [1, 1]} : vector<4x130xf32> to vector<4x128xf32>
    %12 = arith.truncf %11 : vector<4x128xf32> to vector<4x128xbf16>
    %c1 = arith.constant 1 : index
    %c0_7 = arith.constant 0 : index
    %c0_8 = arith.constant 0 : index
    %13 = vector.load %arg3[%c1, %c0_7, %c0_8] : memref<3x4x4xbf16, #tpu.memory_space<vmem>>, vector<1x4x4xbf16>
    %14 = vector.shape_cast %13 : vector<1x4x4xbf16> to vector<4x4xbf16>
    %cst_9 = arith.constant dense<0.000000e+00> : vector<4x128xf32>
    %15 = tpu.matmul %14, %12, %cst_9 {dimension_numbers = #tpu.dot_dimension_numbers<[1], [0], [0], [1], [0, 0, 1, 1], [], []>} : vector<4x4xbf16>, vector<4x128xbf16>, vector<4x128xf32> -> vector<4x128xf32>
    %16 = arith.addf %10, %15 : vector<4x128xf32>
    %17 = vector.extract_strided_slice %3 {offsets = [0, 2], sizes = [4, 128], strides = [1, 1]} : vector<4x130xf32> to vector<4x128xf32>
    %18 = arith.truncf %17 : vector<4x128xf32> to vector<4x128xbf16>
    %c2 = arith.constant 2 : index
    %c0_10 = arith.constant 0 : index
    %c0_11 = arith.constant 0 : index
    %19 = vector.load %arg3[%c2, %c0_10, %c0_11] : memref<3x4x4xbf16, #tpu.memory_space<vmem>>, vector<1x4x4xbf16>
    %20 = vector.shape_cast %19 : vector<1x4x4xbf16> to vector<4x4xbf16>
    %cst_12 = arith.constant dense<0.000000e+00> : vector<4x128xf32>
    %21 = tpu.matmul %20, %18, %cst_12 {dimension_numbers = #tpu.dot_dimension_numbers<[1], [0], [0], [1], [0, 0, 1, 1], [], []>} : vector<4x4xbf16>, vector<4x128xbf16>, vector<4x128xf32> -> vector<4x128xf32>
    %22 = arith.addf %16, %21 : vector<4x128xf32>
    %c0_13 = arith.constant 0 : index
    %c0_14 = arith.constant 0 : index
    %23 = vector.load %arg4[%c0_13, %c0_14] : memref<4x1xf32, #tpu.memory_space<vmem>>, vector<4x1xf32>
    %24 = vector.broadcast %23 : vector<4x1xf32> to vector<4x128xf32>
    %25 = arith.addf %22, %24 : vector<4x128xf32>
    %cst_15 = arith.constant 0.000000e+00 : f32
    %26 = vector.broadcast %cst_15 : f32 to vector<4x128xf32>
    %27 = arith.maximumf %25, %26 : vector<4x128xf32>
    %cst_16 = arith.constant 0.000000e+00 : f32
    %28 = vector.broadcast %cst_16 : f32 to vector<4x2xf32>
    %29 = tpu.concatenate %28, %27 in 1 : vector<4x2xf32>, vector<4x128xf32> -> vector<4x130xf32>
    %cst_17 = arith.constant 0.000000e+00 : f32
    %30 = vector.broadcast %cst_17 : f32 to vector<4x128xf32>
    %31 = vector.extract_strided_slice %29 {offsets = [0, 0], sizes = [4, 128], strides = [1, 1]} : vector<4x130xf32> to vector<4x128xf32>
    %32 = arith.truncf %31 : vector<4x128xf32> to vector<4x128xbf16>
    %c0_18 = arith.constant 0 : index
    %c0_19 = arith.constant 0 : index
    %c0_20 = arith.constant 0 : index
    %33 = vector.load %arg5[%c0_18, %c0_19, %c0_20] : memref<3x4x4xbf16, #tpu.memory_space<vmem>>, vector<1x4x4xbf16>
    %34 = vector.shape_cast %33 : vector<1x4x4xbf16> to vector<4x4xbf16>
    %cst_21 = arith.constant dense<0.000000e+00> : vector<4x128xf32>
    %35 = tpu.matmul %34, %32, %cst_21 {dimension_numbers = #tpu.dot_dimension_numbers<[1], [0], [0], [1], [0, 0, 1, 1], [], []>} : vector<4x4xbf16>, vector<4x128xbf16>, vector<4x128xf32> -> vector<4x128xf32>
    %36 = arith.addf %30, %35 : vector<4x128xf32>
    %37 = vector.extract_strided_slice %29 {offsets = [0, 1], sizes = [4, 128], strides = [1, 1]} : vector<4x130xf32> to vector<4x128xf32>
    %38 = arith.truncf %37 : vector<4x128xf32> to vector<4x128xbf16>
    %c1_22 = arith.constant 1 : index
    %c0_23 = arith.constant 0 : index
    %c0_24 = arith.constant 0 : index
    %39 = vector.load %arg5[%c1_22, %c0_23, %c0_24] : memref<3x4x4xbf16, #tpu.memory_space<vmem>>, vector<1x4x4xbf16>
    %40 = vector.shape_cast %39 : vector<1x4x4xbf16> to vector<4x4xbf16>
    %cst_25 = arith.constant dense<0.000000e+00> : vector<4x128xf32>
    %41 = tpu.matmul %40, %38, %cst_25 {dimension_numbers = #tpu.dot_dimension_numbers<[1], [0], [0], [1], [0, 0, 1, 1], [], []>} : vector<4x4xbf16>, vector<4x128xbf16>, vector<4x128xf32> -> vector<4x128xf32>
    %42 = arith.addf %36, %41 : vector<4x128xf32>
    %43 = vector.extract_strided_slice %29 {offsets = [0, 2], sizes = [4, 128], strides = [1, 1]} : vector<4x130xf32> to vector<4x128xf32>
    %44 = arith.truncf %43 : vector<4x128xf32> to vector<4x128xbf16>
    %c2_26 = arith.constant 2 : index
    %c0_27 = arith.constant 0 : index
    %c0_28 = arith.constant 0 : index
    %45 = vector.load %arg5[%c2_26, %c0_27, %c0_28] : memref<3x4x4xbf16, #tpu.memory_space<vmem>>, vector<1x4x4xbf16>
    %46 = vector.shape_cast %45 : vector<1x4x4xbf16> to vector<4x4xbf16>
    %cst_29 = arith.constant dense<0.000000e+00> : vector<4x128xf32>
    %47 = tpu.matmul %46, %44, %cst_29 {dimension_numbers = #tpu.dot_dimension_numbers<[1], [0], [0], [1], [0, 0, 1, 1], [], []>} : vector<4x4xbf16>, vector<4x128xbf16>, vector<4x128xf32> -> vector<4x128xf32>
    %48 = arith.addf %42, %47 : vector<4x128xf32>
    %c0_30 = arith.constant 0 : index
    %c0_31 = arith.constant 0 : index
    %49 = vector.load %arg6[%c0_30, %c0_31] : memref<4x1xf32, #tpu.memory_space<vmem>>, vector<4x1xf32>
    %50 = vector.broadcast %49 : vector<4x1xf32> to vector<4x128xf32>
    %51 = arith.addf %48, %50 : vector<4x128xf32>
    %cst_32 = arith.constant 0.000000e+00 : f32
    %52 = vector.broadcast %cst_32 : f32 to vector<4x128xf32>
    %53 = arith.maximumf %51, %52 : vector<4x128xf32>
    %c0_33 = arith.constant 0 : index
    %c0_34 = arith.constant 0 : index
    %c0_35 = arith.constant 0 : index
    %54 = vector.load %arg2[%c0_33, %c0_34, %c0_35] : memref<1x4x128xf32, #tpu.memory_space<vmem>>, vector<1x4x128xf32>
    %55 = vector.shape_cast %54 : vector<1x4x128xf32> to vector<4x128xf32>
    %56 = vector.shape_cast %53 : vector<4x128xf32> to vector<1x1x4x128xf32>
    %57 = vector.shape_cast %55 : vector<4x128xf32> to vector<4x1x1x128xf32>
    %58 = vector.broadcast %56 : vector<1x1x4x128xf32> to vector<4x1x4x128xf32>
    %59 = vector.broadcast %57 : vector<4x1x1x128xf32> to vector<4x1x4x128xf32>
    %60 = arith.addf %58, %59 : vector<4x1x4x128xf32>
    %cst_36 = arith.constant 0.000000e+00 : f32
    %61 = vector.broadcast %cst_36 : f32 to vector<4x1x4x128xf32>
    %62 = arith.maximumf %60, %61 : vector<4x1x4x128xf32>
    %c0_37 = arith.constant 0 : index
    %c0_38 = arith.constant 0 : index
    %c0_39 = arith.constant 0 : index
    %c0_40 = arith.constant 0 : index
    %63 = vector.load %arg7[%c0_37, %c0_38, %c0_39, %c0_40] : memref<4x1x4x128xf32, #tpu.memory_space<vmem>>, vector<4x1x4x128xf32>
    tpu.vector_store %arg7[%c0_37, %c0_38, %c0_39, %c0_40], %62 {strides = array<i32>} : memref<4x1x4x128xf32, #tpu.memory_space<vmem>>, vector<4x1x4x128xf32>,
    return
  }
  func.func @transform_0(%arg0: i32) -> (i32, i32, i32) {
    %c0_i32 = arith.constant 0 : i32
    %c0_i32_0 = arith.constant 0 : i32
    %c0_i32_1 = arith.constant 0 : i32
    return %arg0, %c0_i32, %c0_i32_0 : i32, i32, i32
  }
  func.func @transform_1(%arg0: i32) -> (i32, i32, i32) {
    %c0_i32 = arith.constant 0 : i32
    %c0_i32_0 = arith.constant 0 : i32
    %c0_i32_1 = arith.constant 0 : i32
    return %arg0, %c0_i32, %c0_i32_0 : i32, i32, i32
  }
  func.func @transform_2(%arg0: i32) -> (i32, i32, i32) {
    %c0_i32 = arith.constant 0 : i32
    %c0_i32_0 = arith.constant 0 : i32
    %c0_i32_1 = arith.constant 0 : i32
    %c0_i32_2 = arith.constant 0 : i32
    return %c0_i32, %c0_i32_0, %c0_i32_1 : i32, i32, i32
  }
  func.func @transform_3(%arg0: i32) -> (i32, i32) {
    %c0_i32 = arith.constant 0 : i32
    %c0_i32_0 = arith.constant 0 : i32
    %c0_i32_1 = arith.constant 0 : i32
    return %c0_i32, %c0_i32_0 : i32, i32
  }
  func.func @transform_4(%arg0: i32) -> (i32, i32, i32) {
    %c0_i32 = arith.constant 0 : i32
    %c0_i32_0 = arith.constant 0 : i32
    %c0_i32_1 = arith.constant 0 : i32
    %c0_i32_2 = arith.constant 0 : i32
    return %c0_i32, %c0_i32_0, %c0_i32_1 : i32, i32, i32
  }
  func.func @transform_5(%arg0: i32) -> (i32, i32) {
    %c0_i32 = arith.constant 0 : i32
    %c0_i32_0 = arith.constant 0 : i32
    %c0_i32_1 = arith.constant 0 : i32
    return %c0_i32, %c0_i32_0 : i32, i32
  }
  func.func @transform_6(%arg0: i32) -> (i32, i32, i32, i32) {
    %c0_i32 = arith.constant 0 : i32
    %c0_i32_0 = arith.constant 0 : i32
    %c0_i32_1 = arith.constant 0 : i32
    %c0_i32_2 = arith.constant 0 : i32
    return %c0_i32, %arg0, %c0_i32_0, %c0_i32_1 : i32, i32, i32, i32
  }
}

</mosaic_0001>

<bundles_post_ra>
// kernel: tpu_custom_call.1
= control target key start
LH: loop header
LB: loop body
LE: loop exit
PB: predicated region body
PF: predicated region fallthrough
CT: control target
= control target key end

     0   :  { %11 = vsyncpa [#allocation3], 0  ;;  %s1420_s0 = inlined_call_operand.hbm [shape: f32[4,4,128], index: 0, kind: input, shape index: {}]   ;;  %s1421_s1 = inlined_call_operand.hbm [shape: f32[4,4,128], index: 1, kind: input, shape index: {}]   ;;  %s1422_s2 = inlined_call_operand.vmem [shape: bf16[3,4,4], index: 2, kind: input, shape index: {}]   ;;  %s1423_s3 = inlined_call_operand.vmem [shape: f32[4,1], index: 3, kind: input, shape index: {}]   ;;  %s1424_s4 = inlined_call_operand.vmem [shape: bf16[3,4,4], index: 4, kind: input, shape index: {}]   ;;  %s1425_s5 = inlined_call_operand.vmem [shape: f32[4,1], index: 5, kind: input, shape index: {}]   ;;  %s1426_s6 = inlined_call_operand.hbm [shape: f32[4,4,4,128], index: 6, kind: output, shape index: {}]  }
   0x1   :  { %13 = vsyncpa [#allocation3 + $0x1], 0 }
   0x2   :  { %14 = vsyncpa [#allocation6], 0 }
   0x3   :  { %16 = vsyncpa [#allocation6 + $0x1], 0 }
   0x4   :  { %17 = vsyncpa [#allocation4], 0 }
   0x5   :  { %19 = vsyncpa [#allocation4 + $0x1], 0  ;;  %s1137_s21 = smov 0   ;;  %s1139_s22 = smov 0  }
   0x6   :  { %s1141_s23 = smov 0   ;;  %s1143_s24 = smov 0  }
   0x7 LB: > { %s1158_s25 = sadd.s32 4294967295, %s1087_s24   ;;  %s820_s26 = sadd.s32 4294967294, %s1087_s24   ;;  %s1087_s24 = sphi %s1143_s24, %s1444_s24   ;;  %s1083_s23 = sphi %s1141_s23, %s1443_s23   ;;  %s1079_s22 = sphi %s1139_s22, %s1442_s22   ;;  %s1075_s21 = sphi %s1137_s21, %s1441_s21  }
   0x8   : > { %s1162_s27 = sadd.s32 1, %s1087_s24   ;;  %s32_s28 = sadd.s32 1, %s1083_s23 }
   0x9   : > { %s29_s29 = ssub.s32 %s1087_s24, %s1162_s27  ;;  %p39_p0 = scmp.ne.s32.totalorder %s1083_s23, %s1079_s22 }
   0xa   : > { %p30_p1 = scmp.eq.s32.totalorder %s29_s29, 0  ;;  %p40_p2 = scmp.eq.s32.totalorder %s1087_s24, 0 }
   0xb   : > { %p45_p3 = scmp.ne.s32.totalorder %s1079_s22, %s1075_s21  ;;  %p46_p4 = scmp.eq.s32.totalorder %s1158_s25, 0 }
   0xc   : > { %s1174_s30 = scalar_select %p30_p1, %s1083_s23, %s32_s28  }
   0xd   : > { %p1176_p5 = por %p40_p2, %p39_p0  ;;  %p1180_p6 = por %p46_p4, %p45_p3 }
   0xe   : > { %p179_p7 = scmp.eq.s32.totalorder %s1158_s25, 3  ;;  %p185_p8 = scmp.eq.s32.totalorder %s820_s26, 3 }
   0xf   : > { %s1430_s8 = scalar_select %p1180_p6, 1, 0 }
  0x10   : > { %p911_p9 = scmp.lt.s32.totalorder %s1087_s24, 4  ;;  %p1186_p10 = por %p179_p7, %p39_p0 }
  0x11   : > { %p1190_p11 = por %p185_p8, %p45_p3  ;;  %s1195_s11 = sand.u32 1, %s1083_s23  }
  0x12   : > { %s1431_s9 = scalar_select %p1186_p10, 1, 0 }
  0x13   : > { %s1432_s10 = scalar_select %p1190_p11, 1, 0 }
  0x14   : > { %s824_s12 = sshll.u32 %s1087_s24, 6  ;;  %s823_s13 = sshll.u32 %s1195_s11, 2 }
  0x15   : > { %s1204_s16 = scalar_lea.hbm %s1420_s0, %s824_s12  ;;  %s221_s17 = scalar_lea.vmem [#allocation2], %s823_s13 }
  0x16   : > { %s228_s18 = sshll.u32 %s221_s17, 4  ;;  %p1210_p12 = pnand %p911_p9, %p1176_p5  ;;  %s1214_s18 = int_to_ptr.vmem [resolvable:$true] %s228_s18 }
  0x17   : > { %s218_s20 = scalar_lea.sflag [#allocation3], %s1195_s11  ;;  %s957_s26 = scalar_lea.hbm %s1204_s16, 64 }
  0x18   : > { %p958_p1 = scmp.ne.s32.totalorder %s1204_s16, %s957_s26  ;;  %p959_p2 = pneg %p1210_p12 }
  0x19   : > { %s962_s7 = scalar_lea.hbm %s1420_s0, 256  ;;  %p963_p5 = scmp.lt.u32.totalorder %s1204_s16, %s1420_s0 }
  0x1a   : > { %p960_p3 = pnand %p959_p2, %p958_p1  ;;  %p964_p7 = scmp.lt.u32.totalorder %s962_s7, %s957_s26 }
  0x1b   : > { %p966_p9 = scmp.lt.u32.totalorder %s957_s26, %s1204_s16 }
  0x1c   : > { %p961_p4 = pneg %p960_p3  ;;  %p965_p8 = por %p964_p7, %p963_p5 }
  0x1e   : > { %p967_p13 = por %p966_p9, %p965_p8 }
  0x20   : > { %p968_p0 = pnand %p967_p13, %p961_p4 }
  0x22   : > { %971 = shalt.err (!%p968_p0)
}
  0x23   : > { %s972_s17 = scalar_lea.vmem %s1214_s18, 64  ;;  %s1089_s28 = smov [#allocation2]  }
  0x24   : > { %p973_p1 = scmp.ne.s32.totalorder %s1214_s18, %s972_s17  ;;  %s977_s29 = sshll.u32 %s1089_s28, 4  ;;  %s978_s29 = int_to_ptr.vmem [resolvable:$false] %s977_s29 }
  0x25   : > { %s979_s14 = scalar_lea.vmem %s978_s29, 128  ;;  %p980_p10 = scmp.lt.s32.totalorder %s1214_s18, %s978_s29 }
  0x26   : > { %p975_p3 = pnand %p973_p1, %p959_p2  ;;  %p981_p5 = scmp.lt.s32.totalorder %s979_s14, %s972_s17 }
  0x28   : > { %p976_p11 = pneg %p975_p3  ;;  %p982_p7 = por %p981_p5, %p980_p10 }
  0x2a   : > { %p983_p8 = pnand %p982_p7, %p976_p11 }
  0x2c   : > { %986 = shalt.err (!%p983_p8)
}
  0x2d   : > { %903 = dma.hbm_to_vmem [thread:$0]  (!%p1210_p12), %s1204_s16, 64, %s1214_s18, %s218_s20  }
  0x2e   : > { %p1434_p13 = scmp.lt.s32.totalorder %s1087_s24, 5  ;;  %p1435_p0 = scmp.ge.s32.totalorder %s1087_s24, 1 }
  0x2f   : > { %s1257_s17 = scalar_lea.hbm %s1421_s1, %s824_s12  ;;  %s239_s28 = scalar_lea.vmem [#allocation5], %s823_s13 }
  0x30   : > { %p1248_p4 = pnand %p1435_p0, %p1434_p13  ;;  %s246_s29 = sshll.u32 %s239_s28, 4  ;;  %s247_s29 = int_to_ptr.vmem [resolvable:$true] %s246_s29 }
  0x31   : > { %s236_s16 = scalar_lea.sflag [#allocation6], %s1195_s11  ;;  %s987_s18 = scalar_lea.hbm %s1257_s17, 64 }
  0x32   : > { %s1436_s26 = scalar_select %p1248_p4, 1, 0 }
  0x33   : > { %p988_p10 = scmp.ne.s32.totalorder %s1257_s17, %s987_s18  ;;  %s992_s12 = scalar_lea.hbm %s1421_s1, 256 }
  0x34   : > { %p993_p1 = scmp.lt.u32.totalorder %s1257_s17, %s1421_s1  ;;  %p994_p3 = scmp.lt.u32.totalorder %s992_s12, %s987_s18 }
  0x35   : > { %p990_p11 = pnand %p988_p10, %p959_p2  ;;  %p996_p7 = scmp.lt.u32.totalorder %s987_s18, %s1257_s17 }
  0x36   : > { %p995_p5 = por %p994_p3, %p993_p1 }
  0x37   : > { %p991_p9 = pneg %p990_p11 }
  0x38   : > { %p997_p8 = por %p996_p7, %p995_p5 }
  0x3a   : > { %p998_p13 = pnand %p997_p8, %p991_p9 }
  0x3c   : > { %1001 = shalt.err (!%p998_p13)
}
  0x3d   : > { %s1002_s11 = scalar_lea.vmem %s247_s29, 64  ;;  %s1090_s13 = smov [#allocation5]  }
  0x3e   : > { %p1003_p0 = scmp.ne.s32.totalorder %s247_s29, %s1002_s11  ;;  %s1007_s28 = sshll.u32 %s1090_s13, 4  ;;  %s1008_s28 = int_to_ptr.vmem [resolvable:$false] %s1007_s28 }
  0x3f   : > { %s1009_s20 = scalar_lea.vmem %s1008_s28, 128  ;;  %p1010_p6 = scmp.lt.s32.totalorder %s247_s29, %s1008_s28 }
  0x40   : > { %p1005_p10 = pnand %p1003_p0, %p959_p2  ;;  %p1011_p4 = scmp.lt.s32.totalorder %s1009_s20, %s1002_s11 }
  0x42   : > { %p1006_p11 = pneg %p1005_p10  ;;  %p1012_p1 = por %p1011_p4, %p1010_p6 }
  0x44   : > { %p1013_p3 = pnand %p1012_p1, %p1006_p11 }
  0x46   : > { %1016 = shalt.err (!%p1013_p3)
}
  0x47   : > { %906 = dma.hbm_to_vmem [thread:$0]  (!%p1210_p12), %s1257_s17, 64, %s247_s29, %s236_s16  }
  0x48   : > { %p1437_p9 = scmp.ne.s32.totalorder %s1436_s26, 0 }
  0x49   : > { %s1284_s18 = sand.u32 (!%p1437_p9), 1, %s1079_s22   ;;  %p1438_p2 = scmp.ne.s32.totalorder (!%p1437_p9), %s1430_s8, 0 }
  0x4a   : > { %255 = sbr.rel (%p1437_p9) target bundleno = 1035 (0x40b), region = 44  ;;  %s828_s14 = sshll.u32 (!%p1437_p9), %s1284_s18, 2 }
  0x4b   : > { %s258_s12 = scalar_lea.sflag (!%p1437_p9), [#allocation3], %s1284_s18  ;;  %s261_s7 = scalar_lea.vmem (!%p1437_p9), [#allocation2], %s828_s14 }
  0x51   : > { %1062 = dma.done.wait (%p1438_p2), %s258_s12, 64  }
  0x52   : > { %1064 = vsyncadd (%p1438_p2), %s258_s12, 4294967232  ;;  %s267_s19 = scalar_lea.sflag [#allocation6], %s1284_s18  ;;  %s1293_s17 = scalar_lea.vmem [#allocation5], %s828_s14 }
  0x53   : > { %1066 = dma.done.wait (%p1438_p2), %s267_s19, 64  }
  0x54   : > { %1068 = vsyncadd (%p1438_p2), %s267_s19, 4294967232  ;;  %v1091_v0 = vmov 0.0   ;;  %v305_v1 = vld [vmem:[%s261_s7] sm:$0xf]  ;;  %s1092_s26 = smov 2   ;;  %vm1093_vm0 = vmmov 0   ;;  %v666_v60 = vlaneseq }
  0x55   : > { %864 = vmatprep.subr.bf16.mxu1 %v1091_v0  ;;  %858 = vmatprep.subr.bf16.mxu0 %v1091_v0  ;;  %vm310_vm1 = vcmask 15360   ;;  %vm329_vm2 = vcmask 1041408   ;;  %s1094_s8 = smov 127   ;;  %vm325_vm3 = vcmask 31744   ;;  %v313_v7 = vld [vmem:[%s1422_s2] sm:$0x3] }
  0x56   : > { %307 = vrot.lane.b32.xlu0 %v305_v1, %s1092_s26  ;;  %860 = vmatprep.mubr.msk.bf16.mxu0 %vm1093_vm0, %v1091_v0  ;;  %v1095_v8 = vmov 0   ;;  %s1096_s15 = smov 126   ;;  %v474_v9 = vld [vmem:[%s1423_s3] sm:$0xf]  ;;  %vm323_vm4 = vcmask 1039360   ;;  %vm425_vm5 = vcmask 1031168  }
  0x57   : > { %866 = vmatprep.mubr.msk.bf16.mxu1 %vm1093_vm0, %v1091_v0  ;;  %955 = vset.pattern.permute.xlu1 %v1095_v8  ;;  %v831_v15 = vld [vmem:[%s1422_s2 + $0x2] sm:$0x3]  ;;  %v834_v19 = vld [vmem:[%s1422_s2 + $0x4] sm:$0x3]  ;;  %v488_v42 = vld [vmem:[%s1424_s4] sm:$0x3] }
  0x58   : > { %956 = vset.pattern.permute.xlu0 %v1095_v8  ;;  %v645_v43 = vld [vmem:[%s1425_s5] sm:$0xf]  ;;  %v839_v53 = vld [vmem:[%s1424_s4 + $0x4] sm:$0x3]  ;;  %v1097_v58 = vmov 1966171168  }
  0x59   : > { %v836_v49 = vld [vmem:[%s1424_s4 + $0x2] sm:$0x3]  ;;  %v664_v59 = vunpack.c.l.s4 %v1097_v58  ;;  %v667_v62 = vshrl.u32 %v666_v60, 7  ;;  %s830_s13 = sshll.u32 %s1284_s18, 4  ;;  %s843_s20 = sshll.u32 %s1158_s25, 6 }
  0x5a   : > { %v841_v63 = vld.sshfl [vmem:[%s1293_s17] sm:$0x33 pattern:$0x75316420]  ;;  %s303_s17 = scalar_lea.vmem [#allocation7], %s830_s13  ;;  %s1377_s7 = scalar_lea.hbm %s1426_s6, %s843_s20 }
  0x5b   : > { %v665_v61 = vunpack.c.0.s8 %v664_v59  ;;  %v662_v1 = vcombine.high %v841_v63, %v841_v63  ;;  %s724_s28 = sshll.u32 %s303_s17, 4  ;;  %s712_s25 = scalar_lea.sflag [#allocation4], %s1284_s18  ;;  %s1372_s28 = int_to_ptr.vmem [resolvable:$true] %s724_s28 }
  0x5c   : > { %s1017_s19 = scalar_lea.vmem %s1372_s28, 256  ;;  %p1439_p12 = scmp.ne.s32.totalorder %s1431_s9, 0 }
  0x5d   : > { %p1018_p6 = scmp.ne.s32.totalorder %s1372_s28, %s1017_s19 }
  0x5f   : > { %p1019_p4 = pnand %p1018_p6, %p1439_p12 }
  0x61   : > { %p1020_p5 = pneg %p1019_p4 }
  0xc8   : > { %v308_v2 = vpop.permute.xlu0 %307 }
  0xc9   : > { %v311_v3 = vsel %vm310_vm1, 0.0, %v308_v2  ;;  %v314_v4 = vpack.c.bf16 %v308_v2, %v308_v2  ;;  %v668_v2 = vsub.s32 %v665_v61, %v667_v62 }
  0xca   : > { %v312_v5 = vpack.c.bf16 %v311_v3, %v311_v3 }
  0xcb   : > { %321 = vrot.lane.b32.xlu1 %v314_v4, %s1094_s8  ;;  %v676_v8 = vrot.slane %v662_v1, %v668_v2 }
  0xcc   : > { %319 = vrot.lane.b32.xlu0 %v312_v5, %s1094_s8  ;;  %v377_v6 = vsel %vm329_vm2, %v312_v5, 0 }
  0xcd   : > { %865 = vmatpush3.bf16.msra.mxu1 %v377_v6 }
  0xce   : > { %876 = vmatprep.subr.bf16.mxu1 %v1091_v0 }
  0xcf   : > { %421 = vrot.lane.b32.xlu1 %v312_v5, %s1096_s15 }
  0xd0   : > { %423 = vrot.lane.b32.xlu0 %v314_v4, %s1096_s15  ;;  %867 = vmatmul.mubr.msk.bf16.vlgmr.msra.gmra.mrb[0].mxu1 %vm325_vm3, %v313_v7  ;;  %v669_v7 = vrot.slane %v841_v63, %v668_v2 }
  0xd1   : > { %878 = vmatprep.mubr.msk.bf16.mxu1 %vm1093_vm0, %v1091_v0 }
  0xd3   : > { %477 = vperm.xlu1 %955, %v474_v9   ;;  %v681_v9 = vsub.s32 0, %v667_v62 }
 0x13d   : > { %v322_v10 = vpop.permute.xlu1 %321 }
 0x13e   : > { %v320_v11 = vpop.permute.xlu0 %319 }
 0x13f   : > { %v324_v12 = vsel %vm323_vm4, %v320_v11, %v322_v10  ;;  %v677_v10 = vcombine.high %v669_v7, %v669_v7  ;;  %v678_v11 = vcombine.high %v676_v8, %v676_v8 }
 0x140   : > { %v331_v13 = vsel %vm329_vm2, %v324_v12, 0 }
 0x141   : > { %v422_v14 = vpop.permute.xlu1 %421  ;;  %859 = vmatpush3.bf16.msra.mxu0 %v331_v13 }
 0x142   : > { %v424_v16 = vpop.permute.xlu0 %423  ;;  %870 = vmatprep.subr.bf16.mxu0 %v1091_v0 }
 0x143   : > { %v426_v17 = vsel %vm425_vm5, %v422_v14, %v424_v16  ;;  %v682_v16 = vrot.slane %v669_v7, %v681_v9 }
 0x144   : > { %v431_v18 = vsel %vm329_vm2, %v426_v17, 0  ;;  %861 = vmatmul.mubr.msk.bf16.vlgmr.msra.gmra.mrb[0].mxu0 %vm325_vm3, %v831_v15 }
 0x145   : > { %871 = vmatpush3.bf16.msra.mxu0 %v431_v18  ;;  %872 = vmatprep.mubr.msk.bf16.mxu0 %vm1093_vm0, %v1091_v0 }
 0x146   : > { %882 = vmatprep.subr.bf16.mxu0 %v1091_v0 }
 0x14c   : > { %873 = vmatmul.mubr.msk.bf16.vlgmr.msra.gmra.mrb[4].mxu0 %vm325_vm3, %v834_v19  ;;  %v686_v19 = vrot.slane %v676_v8, %v681_v9 }
 0x14d   : > { %884 = vmatprep.mubr.msk.bf16.mxu0 %vm1093_vm0, %v1091_v0 }
 0x152   : > { %v478_v30 = vpop.permute.xlu1 %477 }
 0x1a3   : > { %v413_v20 = vpop.f32.mrb[0].mxu1 }
 0x1a4   : > { %v868_v21 = vpop.f32.mrb[1].mxu1 }
 0x1a5   : > { %v416_v22 = vpop.f32.mrb[2].mxu1  ;;  %v694_v21 = vrot.slane %v678_v11, %v681_v9 }
 0x1a6   : > { %v869_v23 = vpop.f32.mrb[3].mxu1 }
 0x217   : > { %v367_v24 = vpop.f32.mrb[0].mxu0 }
 0x218   : > { %v414_v25 = vadd.f32 %v413_v20, %v367_v24  ;;  %v862_v26 = vpop.f32.mrb[1].mxu0  ;;  %v690_v20 = vrot.slane %v677_v10, %v681_v9 }
 0x219   : > { %v370_v27 = vpop.f32.mrb[2].mxu0 }
 0x21a   : > { %v863_v28 = vpop.f32.mrb[3].mxu0 }
 0x21f   : > { %v467_v29 = vpop.f32.mrb[4].mxu0 }
 0x220   : > { %v473_v31 = vadd.f32 %v467_v29, %v414_v25  ;;  %v874_v32 = vpop.f32.mrb[5].mxu0 }
 0x221   : > { %v470_v33 = vpop.f32.mrb[6].mxu0 }
 0x222   : > { %v480_v34 = vadd.f32 %v478_v30, %v473_v31  ;;  %v875_v35 = vpop.f32.mrb[7].mxu0 }
 0x224   : > { %v481_v36 = vmax.f32 %v480_v34, 0.0 }
 0x226   : > { %483 = vrot.lane.b32.xlu0 %v481_v36, %s1092_s26  ;;  %s1098_s26 = smov [#allocation7]  }
 0x227   : > { %s1021_s29 = sshll.u32 %s1098_s26, 4  ;;  %s1022_s29 = int_to_ptr.vmem [resolvable:$false] %s1021_s29 }
 0x228   : > { %p1024_p7 = scmp.lt.s32.totalorder %s1372_s28, %s1022_s29 }
 0x298   : > { %v484_v37 = vpop.permute.xlu0 %483 }
 0x299   : > { %v486_v38 = vsel %vm310_vm1, 0.0, %v484_v37  ;;  %v489_v39 = vpack.c.bf16 %v484_v37, %v484_v37 }
 0x29a   : > { %v487_v40 = vpack.c.bf16 %v486_v38, %v486_v38 }
 0x29b   : > { %496 = vrot.lane.b32.xlu0 %v489_v39, %s1094_s8 }
 0x29c   : > { %494 = vrot.lane.b32.xlu1 %v487_v40, %s1094_s8  ;;  %v549_v41 = vsel %vm329_vm2, %v487_v40, 0  ;;  %s1023_s8 = scalar_lea.vmem %s1022_s29, 512 }
 0x29d   : > { %883 = vmatpush3.bf16.msra.mxu0 %v549_v41  ;;  %p1025_p8 = scmp.lt.s32.totalorder %s1023_s8, %s1017_s19 }
 0x29f   : > { %595 = vrot.lane.b32.xlu0 %v489_v39, %s1096_s15  ;;  %p1026_p13 = por %p1025_p8, %p1024_p7 }
 0x2a0   : > { %593 = vrot.lane.b32.xlu1 %v487_v40, %s1096_s15  ;;  %885 = vmatmul.mubr.msk.bf16.vlgmr.msra.gmra.mrb[8].mxu0 %vm325_vm3, %v488_v42 }
 0x2a1   : > { %p1027_p0 = pnand %p1026_p13, %p1020_p5 }
 0x2a4   : > { %648 = vperm.xlu1 %955, %v645_v43  }
 0x30d   : > { %v497_v44 = vpop.permute.xlu0 %496 }
 0x30e   : > { %v495_v45 = vpop.permute.xlu1 %494 }
 0x30f   : > { %v498_v46 = vsel %vm323_vm4, %v495_v45, %v497_v44 }
 0x310   : > { %v503_v47 = vsel %vm329_vm2, %v498_v46, 0 }
 0x311   : > { %v596_v48 = vpop.permute.xlu0 %595  ;;  %877 = vmatpush3.bf16.msra.mxu1 %v503_v47 }
 0x312   : > { %v594_v50 = vpop.permute.xlu1 %593  ;;  %888 = vmatprep.subr.bf16.mxu1 %v1091_v0 }
 0x313   : > { %v597_v51 = vsel %vm425_vm5, %v594_v50, %v596_v48 }
 0x314   : > { %v602_v52 = vsel %vm329_vm2, %v597_v51, 0  ;;  %879 = vmatmul.mubr.msk.bf16.vlgmr.msra.gmra.mrb[4].mxu1 %vm325_vm3, %v836_v49 }
 0x315   : > { %889 = vmatpush3.bf16.msra.mxu1 %v602_v52  ;;  %890 = vmatprep.mubr.msk.bf16.mxu1 %vm1093_vm0, %v1091_v0 }
 0x31c   : > { %891 = vmatmul.mubr.msk.bf16.vlgmr.msra.gmra.mrb[8].mxu1 %vm325_vm3, %v839_v53 }
 0x323   : > { %v649_v15 = vpop.permute.xlu1 %648 }
 0x373   : > { %v585_v54 = vpop.f32.mrb[8].mxu0 }
 0x374   : > { %v886_v55 = vpop.f32.mrb[9].mxu0 }
 0x375   : > { %v588_v56 = vpop.f32.mrb[10].mxu0 }
 0x376   : > { %v887_v57 = vpop.f32.mrb[11].mxu0 }
 0x3e7   : > { %v539_v0 = vpop.f32.mrb[4].mxu1 }
 0x3e8   : > { %v880_v3 = vpop.f32.mrb[5].mxu1  ;;  %v586_v4 = vadd.f32 %v585_v54, %v539_v0 }
 0x3e9   : > { %v542_v5 = vpop.f32.mrb[6].mxu1 }
 0x3ea   : > { %v881_v6 = vpop.f32.mrb[7].mxu1 }
 0x3ef   : > { %v638_v12 = vpop.f32.mrb[8].mxu1 }
 0x3f0   : > { %v644_v13 = vadd.f32 %v638_v12, %v586_v4  ;;  %v892_v14 = vpop.f32.mrb[9].mxu1 }
 0x3f1   : > { %v641_v17 = vpop.f32.mrb[10].mxu1 }
 0x3f2   : > { %v651_v18 = vadd.f32 %v649_v15, %v644_v13  ;;  %v893_v22 = vpop.f32.mrb[11].mxu1 }
 0x3f4   : > { %v652_v23 = vmax.f32 %v651_v18, 0.0 }
 0x3f6   : > { %v699_v24 = vadd.f32 %v682_v16, %v652_v23  ;;  %v700_v25 = vadd.f32 %v686_v19, %v652_v23  ;;  %v701_v26 = vadd.f32 %v690_v20, %v652_v23  ;;  %v702_v27 = vadd.f32 %v694_v21, %v652_v23 }
 0x3f8   : > { %v703_v28 = vmax.f32 %v699_v24, 0.0  ;;  %v704_v29 = vmax.f32 %v700_v25, 0.0  ;;  %v705_v30 = vmax.f32 %v701_v26, 0.0  ;;  %v706_v31 = vmax.f32 %v702_v27, 0.0 }
 0x3fa   : > { %707 = vst [vmem:[%s303_s17] sm:$0xf] %v703_v28  ;;  %708 = vst [vmem:[%s303_s17 + $0x4] sm:$0xf] %v704_v29 }
 0x3fb   : > { %709 = vst [vmem:[%s303_s17 + $0x8] sm:$0xf] %v705_v30  ;;  %710 = vst [vmem:[%s303_s17 + $0xc] sm:$0xf] %v706_v31 }
 0x3fc   : > { %1030 = shalt.err (!%p1027_p0)
}
 0x3fd   : > { %s1031_s16 = scalar_lea.hbm %s1377_s7, 256  ;;  %s1035_s13 = scalar_lea.hbm %s1426_s6, 1024 }
 0x3fe   : > { %p1032_p10 = scmp.ne.s32.totalorder %s1377_s7, %s1031_s16  ;;  %p1036_p3 = scmp.lt.u32.totalorder %s1377_s7, %s1426_s6 }
 0x3ff   : > { %p1037_p9 = scmp.lt.u32.totalorder %s1035_s13, %s1031_s16  ;;  %p1039_p6 = scmp.lt.u32.totalorder %s1031_s16, %s1377_s7 }
 0x400   : > { %p1033_p11 = pnand %p1032_p10, %p1439_p12 }
 0x401   : > { %p1038_p2 = por %p1037_p9, %p1036_p3 }
 0x402   : > { %p1034_p1 = pneg %p1033_p11 }
 0x403   : > { %p1040_p4 = por %p1039_p6, %p1038_p2 }
 0x405   : > { %p1041_p5 = pnand %p1040_p4, %p1034_p1 }
 0x407   : > { %1044 = shalt.err (!%p1041_p5)
}
 0x408   : > { %s1099_s14 = smov 64   ;;  %s1100_s12 = smov 256  }
 0x409   : > { %s1101_s19 = smov 4  }
 0x40a   : > { %898 = dma.vmem_to_hbm [thread:$0]  (%p1439_p12), %s1372_s28, 256, %s1377_s7, %s712_s25, %s1099_s14, %s1100_s12, %s1101_s19  }
 0x40b PF: > { %p912_p7 = scmp.ge.s32.totalorder %s1087_s24, 2  ;;  %s739_s26 = sand.u32 1, %s1075_s21  }
 0x40c   : > { %p1440_p8 = scmp.ne.s32.totalorder %s1432_s10, 0  ;;  %s740_s29 = scalar_lea.sflag [#allocation4], %s739_s26 }
 0x40e   : > { %p908_p13 = pnand %p912_p7, %p1440_p8 }
 0x410   : > { %1070 = dma.done.wait (!%p908_p13), %s740_s29, 256  }
 0x411   : > { %1072 = vsyncadd (!%p908_p13), %s740_s29, 4294967040  ;;  %p22_p0 = scmp.ge.s32.totalorder %s1162_s27, 6   ;;  %s1441_s21 = smov %s1079_s22 }
 0x412   : > { %s1442_s22 = smov %s1083_s23  ;;  %s1443_s23 = smov %s1174_s30 }
 0x413   : > { %s1444_s24 = smov %s1162_s27  ;;  %24 = sbr.rel (!%p22_p0) target bundleno = 7 (0x7), region = 106 }
 0x41a   :  { %745 = vsyncpa [#allocation3], 1 }
 0x41b   :  { %747 = vsyncpa [#allocation3 + $0x1], 1 }
 0x41c   :  { %748 = vsyncpa [#allocation6], 1 }
 0x41d   :  { %750 = vsyncpa [#allocation6 + $0x1], 1 }
 0x41e   :  { %751 = vsyncpa [#allocation4], 1 }
 0x41f   :  { %753 = vsyncpa [#allocation4 + $0x1], 1 }

</bundles_post_ra>
